<compile_context>
chip_gen: v5e
topology: v5e:2x2
jax: 0.10.0
libtpu: 0.0.40
codegen_flags: <defaults>
</compile_context>

<pallas_src>
import functools

import jax
import jax.numpy as jnp
from jax import lax
from jax.experimental import pallas as pl
from jax.experimental.pallas import tpu as pltpu


def conv3x3_bias_lrelu_kernel(x_ref, w_ref, b_ref, o_ref, *,
                              row_pitch, out_lanes, negative_slope):
    # x_ref: (1, 1, Cin, L_in)   flattened zero-padded row tile (rows have pitch row_pitch=W+2)
    # w_ref: (9, Cout, Cin)      resident conv weights, tap index k = kh*3 + kw
    # b_ref: (Cout, 1)           resident f32 bias
    # o_ref: (1, 1, Cout, out_lanes)  conv output tile (pre-pixel-shuffle), LeakyReLU applied
    acc = None
    for k in range(9):                      # statically unrolled: 9 accumulating MXU dots
        kh, kw = divmod(k, 3)
        off = kh * row_pitch + kw           # tap (kh, kw) is a pure lane shift of the tile
        xs = x_ref[0, 0, :, pl.ds(off, out_lanes)]          # (Cin, out_lanes)
        part = jnp.dot(w_ref[k], xs, preferred_element_type=jnp.float32)
        acc = part if acc is None else acc + part
    y = acc + b_ref[...]                                    # f32 bias add (broadcast)
    y = jnp.where(y >= 0.0, y, negative_slope * y)          # LeakyReLU(0.2), valid pre-shuffle
    o_ref[0, 0] = y.astype(o_ref.dtype)


def _vmem_budget_bytes():
    """Generation-aware per-step VMEM budget.  Kept under the default scoped limits
    (v5e: 16 MiB, v6e/v7x: 32 MiB) so no vmem_limit_bytes override is required."""
    try:
        kind = jax.devices()[0].device_kind.lower()
    except Exception:  # pragma: no cover - defensive
        kind = ""
    if "v6" in kind:
        return 24 << 20     # 128 MiB physical VMEM, 32 MiB default scoped
    if "v7" in kind:
        return 20 << 20     # 64 MiB physical per TensorCore
    return 12 << 20         # conservative default (covers v5e's 16 MiB scoped limit)


def _pick_tile_rows(N, H, Wp, Cin, Cout, in_bytes, out_bytes, budget, min_steps=4):
    """Largest row-tile TH that fits the VMEM budget (double-buffered blocks + f32 acc temps)
    while keeping >= min_steps grid steps when achievable.  Divisors of H are preferred
    (no wasted rows), otherwise H is padded in the wrapper."""
    def work(th):
        l_in = (th + 2) * Wp + 2
        l_out = th * Wp
        return (2 * (Cin * l_in * in_bytes + Cout * l_out * out_bytes)
                + 2 * Cout * l_out * 4)
    fits = [th for th in range(1, H + 1) if work(th) <= budget]
    if not fits:
        return 1
    enough = [th for th in fits if N * (-(-H // th)) >= min_steps]
    pool = enough if enough else fits
    best = max(pool)
    divs = [th for th in pool if H % th == 0 and th * 2 >= best]
    return max(divs) if divs else best


@functools.partial(jax.jit, static_argnames=("scale_factor", "compute_dtype"))
def upsample_block(x, weight, bias, scale_factor=2, compute_dtype=jnp.bfloat16):
    N, Cin, H, W = x.shape
    r = scale_factor
    Cout = Cin * r * r
    assert weight.shape == (Cout, Cin, 3, 3)
    assert bias.shape == (Cout,)

    out_dtype = x.dtype
    cdt = jnp.dtype(compute_dtype) if compute_dtype is not None else jnp.dtype(x.dtype)

    Wp = W + 2                                   # padded row pitch
    TH = _pick_tile_rows(N, H, Wp, Cin, Cout,
                         in_bytes=cdt.itemsize,
                         out_bytes=jnp.dtype(out_dtype).itemsize,
                         budget=_vmem_budget_bytes())
    T = -(-H // TH)                              # number of row tiles
    Hc = T * TH                                  # H padded up so TH always divides
    L_in = (TH + 2) * Wp + 2                     # flattened tile length (+2 so the farthest
                                                 # tap slice stays in-bounds)
    L_out = TH * Wp                              # output lanes per tile (keeps the 2 pad cols)

    # --- wrapper prep: pad + flatten + overlapping row tiles (one small XLA gather pass,
    #     ~(1 + 2/TH)x the input bytes -- NOT 9x im2col) ---
    xc = x.astype(cdt)
    xp = jnp.pad(xc, ((0, 0), (0, 0), (1, Hc - H + 1), (1, 1)))      # conv pad + row round-up
    xflat = xp.reshape(N, Cin, (Hc + 2) * Wp)
    xflat = jnp.pad(xflat, ((0, 0), (0, 0), (0, 2)))
    tiles = jnp.stack(
        [xflat[:, :, t * TH * Wp: t * TH * Wp + L_in] for t in range(T)],
        axis=1)                                                       # (N, T, Cin, L_in)

    w9 = jnp.transpose(weight, (2, 3, 0, 1)).reshape(9, Cout, Cin).astype(cdt)
    b2 = bias.reshape(Cout, 1).astype(jnp.float32)                    # bias stays f32

    kernel = functools.partial(conv3x3_bias_lrelu_kernel,
                               row_pitch=Wp, out_lanes=L_out, negative_slope=0.2)

    conv = pl.pallas_call(
        kernel,
        out_shape=jax.ShapeDtypeStruct((N, T, Cout, L_out), out_dtype),
        grid_spec=pltpu.PrefetchScalarGridSpec(
            num_scalar_prefetch=0,
            grid=(N, T),
            in_specs=[
                pl.BlockSpec((1, 1, Cin, L_in), lambda n, t: (n, t, 0, 0)),
                pl.BlockSpec((9, Cout, Cin), lambda n, t: (0, 0, 0)),   # resident weights
                pl.BlockSpec((Cout, 1), lambda n, t: (0, 0)),           # resident f32 bias
            ],
            out_specs=pl.BlockSpec((1, 1, Cout, L_out), lambda n, t: (n, t, 0, 0)),
        ),
        compiler_params=pltpu.CompilerParams(
            dimension_semantics=("parallel", "parallel")),
    )(tiles, w9, b2)

    # PixelShuffle(r): conv channel c*r*r + r1*r + r2 at (h, w) -> out[c, h*r + r1, w*r + r2].
    # Single fused XLA transpose inside this jit (drops the 2 pad cols / padded rows for free).
    conv = conv.reshape(N, T, Cin, r, r, TH, Wp)[..., :W]
    y = jnp.transpose(conv, (0, 2, 1, 5, 3, 6, 4)).reshape(N, Cin, Hc * r, W * r)
    return y[:, :, : H * r, :]


def reference(x, weight, bias, scale_factor=2):
    N, Cin, H, W = x.shape
    r = scale_factor
    conv = lax.conv_general_dilated(
        x, weight, window_strides=(1, 1), padding="SAME",
        dimension_numbers=("NCHW", "OIHW", "NCHW"))
    conv = conv + bias[None, :, None, None]
    ps = conv.reshape(N, Cin, r, r, H, W)
    ps = jnp.transpose(ps, (0, 1, 4, 2, 5, 3)).reshape(N, Cin, H * r, W * r)
    return jnp.where(ps >= 0, ps, 0.2 * ps)


if __name__ == "__main__":
    key = jax.random.PRNGKey(0)
    k_x, k_w, k_b = jax.random.split(key, 3)

    N, Cin, H, W = 2, 4, 16, 16
    r = 2
    Cout = Cin * r * r

    x = jax.random.normal(k_x, (N, Cin, H, W), dtype=jnp.float32)
    weight = 0.1 * jax.random.normal(k_w, (Cout, Cin, 3, 3), dtype=jnp.float32)
    bias = 0.1 * jax.random.normal(k_b, (Cout,), dtype=jnp.float32)

    # Exact f32-operand path vs XLA reference (tight tolerance).
    out_f32 = jax.block_until_ready(
        upsample_block(x, weight, bias, scale_factor=r, compute_dtype=None))
    ref_f32 = reference(x, weight, bias, scale_factor=r)
    assert out_f32.shape == (N, Cin, H * r, W * r), out_f32.shape
    assert jnp.allclose(out_f32, ref_f32, atol=1e-4, rtol=1e-4), float(
        jnp.max(jnp.abs(out_f32 - ref_f32)))

    # Default bf16-operand / f32-accumulate path vs reference on bf16-rounded inputs.
    out_bf16 = jax.block_until_ready(
        upsample_block(x, weight, bias, scale_factor=r))
    xr = x.astype(jnp.bfloat16).astype(jnp.float32)
    wr = weight.astype(jnp.bfloat16).astype(jnp.float32)
    ref_bf16 = reference(xr, wr, bias, scale_factor=r)
    assert out_bf16.shape == (N, Cin, H * r, W * r), out_bf16.shape
    assert jnp.allclose(out_bf16, ref_bf16, atol=2e-3, rtol=2e-3), float(
        jnp.max(jnp.abs(out_bf16 - ref_bf16)))

    print("KERNEL_OK")
</pallas_src>

<mosaic_0001>
module attributes {stable_mosaic.version = 11 : i64} {
  func.func @conv3x3_bias_lrelu_kernel(%arg0: i32, %arg1: i32, %arg2: memref<1x1x4x182xf32, #tpu.memory_space<vmem>>, %arg3: memref<9x16x4xf32, #tpu.memory_space<vmem>>, %arg4: memref<16x1xf32, #tpu.memory_space<vmem>>, %arg5: memref<1x1x16x144xf32, #tpu.memory_space<vmem>>) attributes {dimension_semantics = [#tpu.dimension_semantics<parallel>, #tpu.dimension_semantics<parallel>], iteration_bounds = array<i64: 2, 2>, scalar_prefetch = 0 : i64, scratch_operands = 0 : i64, tpu.core_type = #tpu.core_type<tc>, window_params = [{transform_indices = @transform_0, window_bounds = array<i64: 1, 1, 4, 182>}, {pipeline_mode = #tpu.pipeline_mode<synchronous>, transform_indices = @transform_1, window_bounds = array<i64: 9, 16, 4>}, {pipeline_mode = #tpu.pipeline_mode<synchronous>, transform_indices = @transform_2, window_bounds = array<i64: 16, 1>}, {transform_indices = @transform_3, window_bounds = array<i64: 1, 1, 16, 144>}]} {
    %c0 = arith.constant 0 : index
    %c0_0 = arith.constant 0 : index
    %c0_1 = arith.constant 0 : index
    %c0_2 = arith.constant 0 : index
    %0 = vector.load %arg2[%c0, %c0_0, %c0_1, %c0_2] : memref<1x1x4x182xf32, #tpu.memory_space<vmem>>, vector<1x1x4x144xf32>
    %1 = vector.shape_cast %0 : vector<1x1x4x144xf32> to vector<4x144xf32>
    %c0_3 = arith.constant 0 : index
    %c0_4 = arith.constant 0 : index
    %c0_5 = arith.constant 0 : index
    %2 = vector.load %arg3[%c0_3, %c0_4, %c0_5] : memref<9x16x4xf32, #tpu.memory_space<vmem>>, vector<1x16x4xf32>
    %3 = vector.shape_cast %2 : vector<1x16x4xf32> to vector<16x4xf32>
    %cst = arith.constant dense<0.000000e+00> : vector<16x144xf32>
    %4 = tpu.matmul %3, %1, %cst {dimension_numbers = #tpu.dot_dimension_numbers<[1], [0], [0], [1], [0, 0, 1, 1], [], []>} : vector<16x4xf32>, vector<4x144xf32>, vector<16x144xf32> -> vector<16x144xf32>
    %c0_6 = arith.constant 0 : index
    %c0_7 = arith.constant 0 : index
    %c0_8 = arith.constant 0 : index
    %c1 = arith.constant 1 : index
    %5 = vector.load %arg2[%c0_6, %c0_7, %c0_8, %c1] : memref<1x1x4x182xf32, #tpu.memory_space<vmem>>, vector<1x1x4x144xf32>
    %6 = vector.shape_cast %5 : vector<1x1x4x144xf32> to vector<4x144xf32>
    %c1_9 = arith.constant 1 : index
    %c0_10 = arith.constant 0 : index
    %c0_11 = arith.constant 0 : index
    %7 = vector.load %arg3[%c1_9, %c0_10, %c0_11] : memref<9x16x4xf32, #tpu.memory_space<vmem>>, vector<1x16x4xf32>
    %8 = vector.shape_cast %7 : vector<1x16x4xf32> to vector<16x4xf32>
    %cst_12 = arith.constant dense<0.000000e+00> : vector<16x144xf32>
    %9 = tpu.matmul %8, %6, %cst_12 {dimension_numbers = #tpu.dot_dimension_numbers<[1], [0], [0], [1], [0, 0, 1, 1], [], []>} : vector<16x4xf32>, vector<4x144xf32>, vector<16x144xf32> -> vector<16x144xf32>
    %10 = arith.addf %4, %9 : vector<16x144xf32>
    %c0_13 = arith.constant 0 : index
    %c0_14 = arith.constant 0 : index
    %c0_15 = arith.constant 0 : index
    %c2 = arith.constant 2 : index
    %11 = vector.load %arg2[%c0_13, %c0_14, %c0_15, %c2] : memref<1x1x4x182xf32, #tpu.memory_space<vmem>>, vector<1x1x4x144xf32>
    %12 = vector.shape_cast %11 : vector<1x1x4x144xf32> to vector<4x144xf32>
    %c2_16 = arith.constant 2 : index
    %c0_17 = arith.constant 0 : index
    %c0_18 = arith.constant 0 : index
    %13 = vector.load %arg3[%c2_16, %c0_17, %c0_18] : memref<9x16x4xf32, #tpu.memory_space<vmem>>, vector<1x16x4xf32>
    %14 = vector.shape_cast %13 : vector<1x16x4xf32> to vector<16x4xf32>
    %cst_19 = arith.constant dense<0.000000e+00> : vector<16x144xf32>
    %15 = tpu.matmul %14, %12, %cst_19 {dimension_numbers = #tpu.dot_dimension_numbers<[1], [0], [0], [1], [0, 0, 1, 1], [], []>} : vector<16x4xf32>, vector<4x144xf32>, vector<16x144xf32> -> vector<16x144xf32>
    %16 = arith.addf %10, %15 : vector<16x144xf32>
    %c0_20 = arith.constant 0 : index
    %c0_21 = arith.constant 0 : index
    %c0_22 = arith.constant 0 : index
    %c18 = arith.constant 18 : index
    %17 = vector.load %arg2[%c0_20, %c0_21, %c0_22, %c18] : memref<1x1x4x182xf32, #tpu.memory_space<vmem>>, vector<1x1x4x144xf32>
    %18 = vector.shape_cast %17 : vector<1x1x4x144xf32> to vector<4x144xf32>
    %c3 = arith.constant 3 : index
    %c0_23 = arith.constant 0 : index
    %c0_24 = arith.constant 0 : index
    %19 = vector.load %arg3[%c3, %c0_23, %c0_24] : memref<9x16x4xf32, #tpu.memory_space<vmem>>, vector<1x16x4xf32>
    %20 = vector.shape_cast %19 : vector<1x16x4xf32> to vector<16x4xf32>
    %cst_25 = arith.constant dense<0.000000e+00> : vector<16x144xf32>
    %21 = tpu.matmul %20, %18, %cst_25 {dimension_numbers = #tpu.dot_dimension_numbers<[1], [0], [0], [1], [0, 0, 1, 1], [], []>} : vector<16x4xf32>, vector<4x144xf32>, vector<16x144xf32> -> vector<16x144xf32>
    %22 = arith.addf %16, %21 : vector<16x144xf32>
    %c0_26 = arith.constant 0 : index
    %c0_27 = arith.constant 0 : index
    %c0_28 = arith.constant 0 : index
    %c19 = arith.constant 19 : index
    %23 = vector.load %arg2[%c0_26, %c0_27, %c0_28, %c19] : memref<1x1x4x182xf32, #tpu.memory_space<vmem>>, vector<1x1x4x144xf32>
    %24 = vector.shape_cast %23 : vector<1x1x4x144xf32> to vector<4x144xf32>
    %c4 = arith.constant 4 : index
    %c0_29 = arith.constant 0 : index
    %c0_30 = arith.constant 0 : index
    %25 = vector.load %arg3[%c4, %c0_29, %c0_30] : memref<9x16x4xf32, #tpu.memory_space<vmem>>, vector<1x16x4xf32>
    %26 = vector.shape_cast %25 : vector<1x16x4xf32> to vector<16x4xf32>
    %cst_31 = arith.constant dense<0.000000e+00> : vector<16x144xf32>
    %27 = tpu.matmul %26, %24, %cst_31 {dimension_numbers = #tpu.dot_dimension_numbers<[1], [0], [0], [1], [0, 0, 1, 1], [], []>} : vector<16x4xf32>, vector<4x144xf32>, vector<16x144xf32> -> vector<16x144xf32>
    %28 = arith.addf %22, %27 : vector<16x144xf32>
    %c0_32 = arith.constant 0 : index
    %c0_33 = arith.constant 0 : index
    %c0_34 = arith.constant 0 : index
    %c20 = arith.constant 20 : index
    %29 = vector.load %arg2[%c0_32, %c0_33, %c0_34, %c20] : memref<1x1x4x182xf32, #tpu.memory_space<vmem>>, vector<1x1x4x144xf32>
    %30 = vector.shape_cast %29 : vector<1x1x4x144xf32> to vector<4x144xf32>
    %c5 = arith.constant 5 : index
    %c0_35 = arith.constant 0 : index
    %c0_36 = arith.constant 0 : index
    %31 = vector.load %arg3[%c5, %c0_35, %c0_36] : memref<9x16x4xf32, #tpu.memory_space<vmem>>, vector<1x16x4xf32>
    %32 = vector.shape_cast %31 : vector<1x16x4xf32> to vector<16x4xf32>
    %cst_37 = arith.constant dense<0.000000e+00> : vector<16x144xf32>
    %33 = tpu.matmul %32, %30, %cst_37 {dimension_numbers = #tpu.dot_dimension_numbers<[1], [0], [0], [1], [0, 0, 1, 1], [], []>} : vector<16x4xf32>, vector<4x144xf32>, vector<16x144xf32> -> vector<16x144xf32>
    %34 = arith.addf %28, %33 : vector<16x144xf32>
    %c0_38 = arith.constant 0 : index
    %c0_39 = arith.constant 0 : index
    %c0_40 = arith.constant 0 : index
    %c36 = arith.constant 36 : index
    %35 = vector.load %arg2[%c0_38, %c0_39, %c0_40, %c36] : memref<1x1x4x182xf32, #tpu.memory_space<vmem>>, vector<1x1x4x144xf32>
    %36 = vector.shape_cast %35 : vector<1x1x4x144xf32> to vector<4x144xf32>
    %c6 = arith.constant 6 : index
    %c0_41 = arith.constant 0 : index
    %c0_42 = arith.constant 0 : index
    %37 = vector.load %arg3[%c6, %c0_41, %c0_42] : memref<9x16x4xf32, #tpu.memory_space<vmem>>, vector<1x16x4xf32>
    %38 = vector.shape_cast %37 : vector<1x16x4xf32> to vector<16x4xf32>
    %cst_43 = arith.constant dense<0.000000e+00> : vector<16x144xf32>
    %39 = tpu.matmul %38, %36, %cst_43 {dimension_numbers = #tpu.dot_dimension_numbers<[1], [0], [0], [1], [0, 0, 1, 1], [], []>} : vector<16x4xf32>, vector<4x144xf32>, vector<16x144xf32> -> vector<16x144xf32>
    %40 = arith.addf %34, %39 : vector<16x144xf32>
    %c0_44 = arith.constant 0 : index
    %c0_45 = arith.constant 0 : index
    %c0_46 = arith.constant 0 : index
    %c37 = arith.constant 37 : index
    %41 = vector.load %arg2[%c0_44, %c0_45, %c0_46, %c37] : memref<1x1x4x182xf32, #tpu.memory_space<vmem>>, vector<1x1x4x144xf32>
    %42 = vector.shape_cast %41 : vector<1x1x4x144xf32> to vector<4x144xf32>
    %c7 = arith.constant 7 : index
    %c0_47 = arith.constant 0 : index
    %c0_48 = arith.constant 0 : index
    %43 = vector.load %arg3[%c7, %c0_47, %c0_48] : memref<9x16x4xf32, #tpu.memory_space<vmem>>, vector<1x16x4xf32>
    %44 = vector.shape_cast %43 : vector<1x16x4xf32> to vector<16x4xf32>
    %cst_49 = arith.constant dense<0.000000e+00> : vector<16x144xf32>
    %45 = tpu.matmul %44, %42, %cst_49 {dimension_numbers = #tpu.dot_dimension_numbers<[1], [0], [0], [1], [0, 0, 1, 1], [], []>} : vector<16x4xf32>, vector<4x144xf32>, vector<16x144xf32> -> vector<16x144xf32>
    %46 = arith.addf %40, %45 : vector<16x144xf32>
    %c0_50 = arith.constant 0 : index
    %c0_51 = arith.constant 0 : index
    %c0_52 = arith.constant 0 : index
    %c38 = arith.constant 38 : index
    %47 = vector.load %arg2[%c0_50, %c0_51, %c0_52, %c38] : memref<1x1x4x182xf32, #tpu.memory_space<vmem>>, vector<1x1x4x144xf32>
    %48 = vector.shape_cast %47 : vector<1x1x4x144xf32> to vector<4x144xf32>
    %c8 = arith.constant 8 : index
    %c0_53 = arith.constant 0 : index
    %c0_54 = arith.constant 0 : index
    %49 = vector.load %arg3[%c8, %c0_53, %c0_54] : memref<9x16x4xf32, #tpu.memory_space<vmem>>, vector<1x16x4xf32>
    %50 = vector.shape_cast %49 : vector<1x16x4xf32> to vector<16x4xf32>
    %cst_55 = arith.constant dense<0.000000e+00> : vector<16x144xf32>
    %51 = tpu.matmul %50, %48, %cst_55 {dimension_numbers = #tpu.dot_dimension_numbers<[1], [0], [0], [1], [0, 0, 1, 1], [], []>} : vector<16x4xf32>, vector<4x144xf32>, vector<16x144xf32> -> vector<16x144xf32>
    %52 = arith.addf %46, %51 : vector<16x144xf32>
    %c0_56 = arith.constant 0 : index
    %c0_57 = arith.constant 0 : index
    %53 = vector.load %arg4[%c0_56, %c0_57] : memref<16x1xf32, #tpu.memory_space<vmem>>, vector<16x1xf32>
    %54 = vector.broadcast %53 : vector<16x1xf32> to vector<16x144xf32>
    %55 = arith.addf %52, %54 : vector<16x144xf32>
    %cst_58 = arith.constant 0.000000e+00 : f32
    %56 = vector.broadcast %cst_58 : f32 to vector<16x144xf32>
    %57 = arith.cmpf oge, %55, %56 : vector<16x144xf32>
    %cst_59 = arith.constant 2.000000e-01 : f32
    %58 = vector.broadcast %cst_59 : f32 to vector<16x144xf32>
    %59 = arith.mulf %58, %55 : vector<16x144xf32>
    %60 = arith.select %57, %55, %59 : vector<16x144xi1>, vector<16x144xf32>
    %c0_60 = arith.constant 0 : index
    %c0_61 = arith.constant 0 : index
    %c0_62 = arith.constant 0 : index
    %c0_63 = arith.constant 0 : index
    %61 = vector.load %arg5[%c0_60, %c0_61, %c0_62, %c0_63] : memref<1x1x16x144xf32, #tpu.memory_space<vmem>>, vector<1x1x16x144xf32>
    %62 = vector.shape_cast %61 : vector<1x1x16x144xf32> to vector<16x144xf32>
    %63 = vector.shape_cast %60 : vector<16x144xf32> to vector<1x1x16x144xf32>
    tpu.vector_store %arg5[%c0_60, %c0_61, %c0_62, %c0_63], %63 {strides = array<i32>} : memref<1x1x16x144xf32, #tpu.memory_space<vmem>>, vector<1x1x16x144xf32>,
    return
  }
  func.func @transform_0(%arg0: i32, %arg1: i32) -> (i32, i32, i32, i32) {
    %c0_i32 = arith.constant 0 : i32
    %c0_i32_0 = arith.constant 0 : i32
    %c0_i32_1 = arith.constant 0 : i32
    return %arg0, %arg1, %c0_i32, %c0_i32_0 : i32, i32, i32, i32
  }
  func.func @transform_1(%arg0: i32, %arg1: i32) -> (i32, i32, i32) {
    %c0_i32 = arith.constant 0 : i32
    %c0_i32_0 = arith.constant 0 : i32
    %c0_i32_1 = arith.constant 0 : i32
    %c0_i32_2 = arith.constant 0 : i32
    return %c0_i32, %c0_i32_0, %c0_i32_1 : i32, i32, i32
  }
  func.func @transform_2(%arg0: i32, %arg1: i32) -> (i32, i32) {
    %c0_i32 = arith.constant 0 : i32
    %c0_i32_0 = arith.constant 0 : i32
    %c0_i32_1 = arith.constant 0 : i32
    return %c0_i32, %c0_i32_0 : i32, i32
  }
  func.func @transform_3(%arg0: i32, %arg1: i32) -> (i32, i32, i32, i32) {
    %c0_i32 = arith.constant 0 : i32
    %c0_i32_0 = arith.constant 0 : i32
    %c0_i32_1 = arith.constant 0 : i32
    return %arg0, %arg1, %c0_i32, %c0_i32_0 : i32, i32, i32, i32
  }
}

</mosaic_0001>

<bundles_post_ra>
// kernel: upsample_block.1
= control target key start
LH: loop header
LB: loop body
LE: loop exit
PB: predicated region body
PF: predicated region fallthrough
CT: control target
= control target key end

     0   :  { %s1192_s12 = smov 0   ;;  %s1194_s13 = smov 0   ;;  %s1375_s0 = inlined_call_operand.vmem [shape: f32[2,2,4,182], index: 0, kind: input, shape index: {}]   ;;  %s1376_s1 = inlined_call_operand.vmem [shape: f32[9,16,4], index: 1, kind: input, shape index: {}]   ;;  %s1377_s2 = inlined_call_operand.vmem [shape: f32[16,1], index: 2, kind: input, shape index: {}]   ;;  %s1378_s3 = inlined_call_operand.vmem [shape: f32[2,2,16,144], index: 3, kind: output, shape index: {}]  }
   0x1   :  { %s1196_s14 = smov 0   ;;  %s1198_s15 = smov 0  }
   0x2   :  { %s1200_s16 = smov 0  }
   0x3 LB: > { %s22_s17 = sadd.s32 1, %s1153_s14  ;;  %s25_s18 = sadd.s32 1, %s1157_s15  ;;  %s1161_s16 = sphi %s1200_s16, %s13_s16   ;;  %s1157_s15 = sphi %s1198_s15, %s1382_s15   ;;  %s1153_s14 = sphi %s1196_s14, %s1381_s14   ;;  %s1149_s13 = sphi %s1194_s13, %s1380_s13   ;;  %s1145_s12 = sphi %s1192_s12, %s1379_s12  }
   0x4   : > { %p23_p0 = scmp.ge.s32.totalorder %s22_s17, 2  ;;  %p990_p1 = scmp.ge.s32.totalorder %s1161_s16, 1 }
   0x5   : > { %p157_p2 = scmp.lt.s32.totalorder %s1161_s16, 5 }
   0x6   : > { %s1384_s17 = smov (%p23_p0, %s22_s17), 0  ;;  %s1386_s18 = smov (!%p23_p0, %s25_s18), %s1157_s15 }
   0x7   : > { %p158_p3 = pnand %p990_p1, %p157_p2  ;;  %p27_p4 = scmp.ge.s32.totalorder %s1386_s18, 2 }
   0x8   : > { %p189_p5 = scmp.lt.s32.totalorder (!%p158_p3), %s1149_s13, 1  ;;  %p191_p6 = scmp.lt.s32.totalorder (!%p158_p3), %s1145_s12, 1 }
   0x9   : > { %s1388_s18 = smov (%p27_p4, %s1386_s18), 0  ;;  %161 = sbr.rel (%p158_p3) target bundleno = 360 (0x168), region = 32 }
   0xa   : > { %s1163_s26 = smov (!%p158_p3), 127   ;;  %s1164_s27 = smov (!%p158_p3), 126  }
   0xb   : > { %s1165_s28 = smov (!%p158_p3), 110   ;;  %s1166_s29 = smov (!%p158_p3), 109  }
   0xc   : > { %s1167_s30 = smov (!%p158_p3), 108   ;;  %s1168_s4 = smov (!%p158_p3), 92  }
   0xd   : > { %s1169_s5 = smov (!%p158_p3), 91   ;;  %s1170_s6 = smov (!%p158_p3), 90  }
   0xe   : > { %s1390_s13 = smov (!%p189_p5, %s1149_s13), 1  ;;  %s1392_s12 = smov (!%p191_p6, %s1145_s12), 1  ;;  %vm230_vm0 = vcmask 1043456   ;;  %vm221_vm1 = vcmask 1039360   ;;  %vm426_vm2 = vcmask 900096   ;;  %v998_v22 = vld [vmem:[%s1376_s1 + $0x18] sm:$0xff] }
   0xf   : > { %s992_s19 = sshll.u32 %s1390_s13, 2  ;;  %s991_s20 = sshll.u32 %s1392_s12, 1  ;;  %vm223_vm3 = vcmask 31744   ;;  %v997_v26 = vld [vmem:[%s1376_s1 + $0x10] sm:$0xff]  ;;  %v208_v28 = vld [vmem:[%s1376_s1] sm:$0xff]  ;;  %vm352_vm4 = vcmask 1031168  }
  0x10   : > { %s195_s21 = sadd.s32 %s992_s19, %s991_s20  ;;  %v1011_v29 = vld [vmem:[%s1376_s1 + $0x20] sm:$0xff]  ;;  %v209_v32 = vld [vmem:[%s1376_s1 + $0x8] sm:$0xff]  ;;  %vm500_vm5 = vcmask 891904   ;;  %v1019_v37 = vld [vmem:[%s1376_s1 + $0x30] sm:$0xff]  ;;  %vm574_vm6 = vcmask 883712   ;;  %vm648_vm7 = vcmask 752640  }
  0x11   : > { %s993_s22 = sshll.u32 %s195_s21, 2  ;;  %v1012_v34 = vld [vmem:[%s1376_s1 + $0x28] sm:$0xff]  ;;  %v1027_v40 = vld [vmem:[%s1376_s1 + $0x40] sm:$0xff]  ;;  %v1020_v42 = vld [vmem:[%s1376_s1 + $0x38] sm:$0xff]  ;;  %v1171_v50 = vmov 0   ;;  %vm722_vm8 = vcmask 744448  }
  0x12   : > { %s197_s25 = scalar_lea.vmem %s1375_s0, %s993_s22  ;;  %v1028_v44 = vld [vmem:[%s1376_s1 + $0x48] sm:$0xff]  ;;  %v1035_v46 = vld [vmem:[%s1376_s1 + $0x50] sm:$0xff]  ;;  %v858_v48 = vld [vmem:[%s1377_s2] sm:$0xff]  ;;  %1120 = vset.pattern.permute.xlu1 %v1171_v50  ;;  %1121 = vset.pattern.permute.xlu2 %v1171_v50  ;;  %vm796_vm9 = vcmask 736256   ;;  %s994_s7 = sshll.u32 %s1392_s12, 2  ;;  %vm887_vm10 = vcmask 130048  }
  0x13   : > { %v207_v0 = vld [vmem:[%s197_s25] sm:$0xff]  ;;  %v859_v49 = vld [vmem:[%s1377_s2 + $0x8] sm:$0xff]  ;;  %1122 = vset.pattern.permute.xlu0 %v1171_v50  ;;  %v1036_v54 = vld [vmem:[%s1376_s1 + $0x58] sm:$0xff]  ;;  %s995_s8 = sshll.u32 %s1390_s13, 3 }
  0x14   : > { %214 = vst [vmem:[#allocation1] ss:$2 sm:$0xff] %v207_v0  ;;  %v1043_v51 = vld [vmem:[%s1376_s1 + $0x60] sm:$0xff]  ;;  %v1044_v57 = vld [vmem:[%s1376_s1 + $0x68] sm:$0xff]  ;;  %v1051_v59 = vld [vmem:[%s1376_s1 + $0x70] sm:$0xff]  ;;  %s204_s9 = sadd.s32 %s995_s8, %s994_s7 }
  0x15   : > { %v1059_v61 = vld [vmem:[%s1376_s1 + $0x80] sm:$0xff]  ;;  %v1052_v62 = vld [vmem:[%s1376_s1 + $0x78] sm:$0xff]  ;;  %v1060_v63 = vld [vmem:[%s1376_s1 + $0x88] sm:$0xff]  ;;  %s996_s10 = sshll.u32 %s204_s9, 3 }
  0x16   : > { %s206_s11 = scalar_lea.vmem %s1378_s3, %s996_s10 }
  0x1b   : > { %v215_v1 = vld.sshfl [vmem:[#allocation1] sm:$0xff pattern:$0x75316420]  ;;  %v216_v2 = vld.sshfl [vmem:[#allocation1 + $0x8] sm:$0xff pattern:$0x75316420] }
  0x1c   : > { %217 = vrot.lane.b32.xlu0 %v215_v1, %s1163_s26  ;;  %281 = vst [vmem:[#allocation1] ss:$2 sm:$0xff] %v207_v0 }
  0x23   : > { %v1231_v3 = vld.sshfl [vmem:[#allocation1] sm:$0xff pattern:$0x75316420]  ;;  %v1233_v4 = vld.sshfl [vmem:[#allocation1 + $0x8] sm:$0xff pattern:$0x75316420] }
  0x24   : > { %219 = vrot.lane.b32.xlu0 %v216_v2, %s1163_s26  ;;  %345 = vst [vmem:[#allocation1] ss:$2 sm:$0xff] %v207_v0 }
  0x2b   : > { %v346_v5 = vld.sshfl [vmem:[#allocation1] sm:$0xff pattern:$0x75316420]  ;;  %v347_v6 = vld.sshfl [vmem:[#allocation1 + $0x8] sm:$0xff pattern:$0x75316420] }
  0x2c   : > { %348 = vrot.lane.b32.xlu1 %v346_v5, %s1164_s27  ;;  %419 = vst [vmem:[#allocation1] ss:$2 sm:$0xff] %v207_v0 }
  0x33   : > { %v420_v7 = vld.sshfl [vmem:[#allocation1] sm:$0xff pattern:$0x75316420]  ;;  %v421_v8 = vld.sshfl [vmem:[#allocation1 + $0x8] sm:$0xff pattern:$0x75316420] }
  0x34   : > { %350 = vrot.lane.b32.xlu1 %v347_v6, %s1164_s27  ;;  %422 = vrot.lane.b32.xlu2 %v420_v7, %s1165_s28  ;;  %493 = vst [vmem:[#allocation1] ss:$2 sm:$0xff] %v207_v0 }
  0x3b   : > { %v495_v9 = vld.sshfl [vmem:[#allocation1 + $0x8] sm:$0xff pattern:$0x75316420]  ;;  %v494_v10 = vld.sshfl [vmem:[#allocation1] sm:$0xff pattern:$0x75316420] }
  0x3c   : > { %498 = vrot.lane.b32.xlu1 %v495_v9, %s1166_s29  ;;  %496 = vrot.lane.b32.xlu0 %v494_v10, %s1166_s29  ;;  %567 = vst [vmem:[#allocation1] ss:$2 sm:$0xff] %v207_v0 }
  0x3d   : > { %424 = vrot.lane.b32.xlu2 %v421_v8, %s1165_s28 }
  0x43   : > { %v569_v11 = vld.sshfl [vmem:[#allocation1 + $0x8] sm:$0xff pattern:$0x75316420]  ;;  %v568_v12 = vld.sshfl [vmem:[#allocation1] sm:$0xff pattern:$0x75316420] }
  0x44   : > { %572 = vrot.lane.b32.xlu0 %v569_v11, %s1167_s30  ;;  %641 = vst [vmem:[#allocation1] ss:$2 sm:$0xff] %v207_v0 }
  0x45   : > { %570 = vrot.lane.b32.xlu2 %v568_v12, %s1167_s30 }
  0x4b   : > { %v642_v13 = vld.sshfl [vmem:[#allocation1] sm:$0xff pattern:$0x75316420]  ;;  %v643_v14 = vld.sshfl [vmem:[#allocation1 + $0x8] sm:$0xff pattern:$0x75316420] }
  0x4c   : > { %644 = vrot.lane.b32.xlu1 %v642_v13, %s1168_s4  ;;  %715 = vst [vmem:[#allocation1] ss:$2 sm:$0xff] %v207_v0 }
  0x4d   : > { %646 = vrot.lane.b32.xlu2 %v643_v14, %s1168_s4 }
  0x53   : > { %v717_v15 = vld.sshfl [vmem:[#allocation1 + $0x8] sm:$0xff pattern:$0x75316420]  ;;  %v716_v16 = vld.sshfl [vmem:[#allocation1] sm:$0xff pattern:$0x75316420] }
  0x54   : > { %720 = vrot.lane.b32.xlu1 %v717_v15, %s1169_s5  ;;  %718 = vrot.lane.b32.xlu0 %v716_v16, %s1169_s5  ;;  %789 = vst [vmem:[#allocation1] ss:$2 sm:$0xff] %v207_v0 }
  0x5b   : > { %v791_v17 = vld.sshfl [vmem:[#allocation1 + $0x8] sm:$0xff pattern:$0x75316420]  ;;  %v790_v18 = vld.sshfl [vmem:[#allocation1] sm:$0xff pattern:$0x75316420] }
  0x5c   : > { %794 = vrot.lane.b32.xlu0 %v791_v17, %s1170_s6  ;;  %792 = vrot.lane.b32.xlu2 %v790_v18, %s1170_s6 }
  0x5d   : > { %862 = vperm.xlu1 %1120, %v858_v48  }
  0x64   : > { %867 = vperm.xlu2 %1121, %v859_v49  }
  0x8e   : > { %v218_v19 = vpop.permute.xlu0 %217  ;;  %v423_v20 = vpop.permute.xlu2 %422 }
  0x96   : > { %v220_v21 = vpop.permute.xlu0 %219 }
  0x97   : > { %1070 = vmatpush.msk.msra.mxu3 %vm230_vm0, %v220_v21  ;;  %v222_v23 = vsel %vm221_vm1, %v218_v19, %v220_v21  ;;  %1002 = vmatpush.msk.msra.mxu1 %vm230_vm0, %v220_v21  ;;  %v425_v24 = vpop.permute.xlu2 %424 }
  0x98   : > { %999 = vmatpush.msk.msra.mxu0 %vm230_vm0, %v222_v23  ;;  %1069 = vmatpush.msk.msra.mxu2 %vm230_vm0, %v222_v23  ;;  %v427_v25 = vsel %vm426_vm2, %v423_v20, %v425_v24 }
  0x99   : > { %1004 = vmatmul.msk.f32.vlgmr.msra.gmra.mxu3 %vm223_vm3, %v998_v22  ;;  %1001 = vmatmul.msk.f32.vlgmr.msra.gmra.mxu2 %vm223_vm3, %v998_v22 }
  0x9a   : > { %1005 = vmatpush.msk.msrb.mxu2 %vm230_vm0, %v1231_v3  ;;  %1008 = vmatpush.msk.msrb.mxu3 %vm230_vm0, %v1233_v4 }
  0x9b   : > { %1003 = vmatmul.msk.f32.vlgmr.msra.gmra.mxu1 %vm223_vm3, %v997_v26  ;;  %1000 = vmatmul.msk.f32.vlgmr.msra.gmra.mxu0 %vm223_vm3, %v997_v26 }
  0x9c   : > { %1021 = vmatpush.msk.msra.mxu2 %vm230_vm0, %v427_v25  ;;  %1024 = vmatpush.msk.msra.mxu3 %vm230_vm0, %v425_v24 }
  0x9e   : > { %v349_v27 = vpop.permute.xlu1 %348 }
  0x9f   : > { %v571_v30 = vpop.permute.xlu2 %570 }
  0xa1   : > { %1009 = vmatmul.msk.f32.vlgmr.msrb.gmra.mxu3 %vm223_vm3, %v208_v28  ;;  %1006 = vmatmul.msk.f32.vlgmr.msrb.gmra.mxu2 %vm223_vm3, %v208_v28 }
  0xa6   : > { %v351_v31 = vpop.permute.xlu1 %350 }
  0xa7   : > { %1016 = vmatpush.msk.msrb.mxu1 %vm230_vm0, %v351_v31  ;;  %v353_v33 = vsel %vm352_vm4, %v349_v27, %v351_v31  ;;  %v647_v39 = vpop.permute.xlu2 %646 }
  0xa8   : > { %1013 = vmatpush.msk.msrb.mxu0 %vm230_vm0, %v353_v33  ;;  %1017 = vmatmul.msk.f32.vlgmr.msrb.gmra.mxu1 %vm223_vm3, %v1011_v29 }
  0xa9   : > { %1010 = vmatmul.msk.f32.gmra.mxu3 %vm223_vm3, %v209_v32  ;;  %1007 = vmatmul.msk.f32.gmra.mxu2 %vm223_vm3, %v209_v32 }
  0xaa   : > { %1014 = vmatmul.msk.f32.vlgmr.msrb.gmra.mxu0 %vm223_vm3, %v1011_v29 }
  0xae   : > { %v499_v35 = vpop.permute.xlu1 %498  ;;  %v497_v36 = vpop.permute.xlu0 %496 }
  0xaf   : > { %v501_v38 = vsel %vm500_vm5, %v497_v36, %v499_v35  ;;  %1032 = vmatpush.msk.msra.mxu1 %vm230_vm0, %v499_v35 }
  0xb0   : > { %1018 = vmatmul.msk.f32.gmra.mxu1 %vm223_vm3, %v1012_v34  ;;  %1029 = vmatpush.msk.msra.mxu0 %vm230_vm0, %v501_v38 }
  0xb1   : > { %1025 = vmatmul.msk.f32.vlgmr.msra.gmra.mxu3 %vm223_vm3, %v1019_v37  ;;  %1022 = vmatmul.msk.f32.vlgmr.msra.gmra.mxu2 %vm223_vm3, %v1019_v37 }
  0xb2   : > { %1015 = vmatmul.msk.f32.gmra.mxu0 %vm223_vm3, %v1012_v34  ;;  %1048 = vmatpush.msk.msrb.mxu1 %vm230_vm0, %v647_v39 }
  0xb6   : > { %v573_v41 = vpop.permute.xlu0 %572  ;;  %v793_v56 = vpop.permute.xlu2 %792 }
  0xb7   : > { %v575_v43 = vsel %vm574_vm6, %v571_v30, %v573_v41  ;;  %1040 = vmatpush.msk.msrb.mxu3 %vm230_vm0, %v573_v41 }
  0xb8   : > { %1033 = vmatmul.msk.f32.vlgmr.msra.gmra.mxu1 %vm223_vm3, %v1027_v40  ;;  %1037 = vmatpush.msk.msrb.mxu2 %vm230_vm0, %v575_v43 }
  0xb9   : > { %1026 = vmatmul.msk.f32.gmra.mxu3 %vm223_vm3, %v1020_v42  ;;  %1023 = vmatmul.msk.f32.gmra.mxu2 %vm223_vm3, %v1020_v42 }
  0xba   : > { %1030 = vmatmul.msk.f32.vlgmr.msra.gmra.mxu0 %vm223_vm3, %v1027_v40 }
  0xbe   : > { %v645_v45 = vpop.permute.xlu1 %644 }
  0xbf   : > { %v649_v47 = vsel %vm648_vm7, %v645_v45, %v647_v39 }
  0xc0   : > { %1034 = vmatmul.msk.f32.gmra.mxu1 %vm223_vm3, %v1028_v44  ;;  %1045 = vmatpush.msk.msrb.mxu0 %vm230_vm0, %v649_v47 }
  0xc1   : > { %1041 = vmatmul.msk.f32.vlgmr.msrb.gmra.mxu3 %vm223_vm3, %v1035_v46  ;;  %1038 = vmatmul.msk.f32.vlgmr.msrb.gmra.mxu2 %vm223_vm3, %v1035_v46 }
  0xc2   : > { %1031 = vmatmul.msk.f32.gmra.mxu0 %vm223_vm3, %v1028_v44 }
  0xc6   : > { %v721_v52 = vpop.permute.xlu1 %720  ;;  %v719_v53 = vpop.permute.xlu0 %718 }
  0xc7   : > { %v723_v55 = vsel %vm722_vm8, %v719_v53, %v721_v52  ;;  %1056 = vmatpush.msk.msra.mxu3 %vm230_vm0, %v721_v52 }
  0xc8   : > { %1049 = vmatmul.msk.f32.vlgmr.msrb.gmra.mxu1 %vm223_vm3, %v1043_v51  ;;  %1053 = vmatpush.msk.msra.mxu2 %vm230_vm0, %v723_v55 }
  0xc9   : > { %1042 = vmatmul.msk.f32.gmra.mxu3 %vm223_vm3, %v1036_v54  ;;  %1039 = vmatmul.msk.f32.gmra.mxu2 %vm223_vm3, %v1036_v54 }
  0xca   : > { %1046 = vmatmul.msk.f32.vlgmr.msrb.gmra.mxu0 %vm223_vm3, %v1043_v51 }
  0xce   : > { %v795_v58 = vpop.permute.xlu0 %794 }
  0xcf   : > { %v797_v60 = vsel %vm796_vm9, %v793_v56, %v795_v58  ;;  %1064 = vmatpush.msk.msra.mxu1 %vm230_vm0, %v795_v58  ;;  %v863_v53 = vpop.permute.xlu1 %862 }
  0xd0   : > { %1050 = vmatmul.msk.f32.gmra.mxu1 %vm223_vm3, %v1044_v57  ;;  %1061 = vmatpush.msk.msra.mxu0 %vm230_vm0, %v797_v60 }
  0xd1   : > { %1057 = vmatmul.msk.f32.vlgmr.msra.gmra.mxu3 %vm223_vm3, %v1051_v59  ;;  %1054 = vmatmul.msk.f32.vlgmr.msra.gmra.mxu2 %vm223_vm3, %v1051_v59 }
  0xd2   : > { %1047 = vmatmul.msk.f32.gmra.mxu0 %vm223_vm3, %v1044_v57 }
  0xd8   : > { %1065 = vmatmul.msk.f32.vlgmr.msra.gmra.mxu1 %vm223_vm3, %v1059_v61 }
  0xd9   : > { %1058 = vmatmul.msk.f32.gmra.mxu3 %vm223_vm3, %v1052_v62  ;;  %1055 = vmatmul.msk.f32.gmra.mxu2 %vm223_vm3, %v1052_v62 }
  0xda   : > { %1062 = vmatmul.msk.f32.vlgmr.msra.gmra.mxu0 %vm223_vm3, %v1059_v61 }
  0xe0   : > { %1066 = vmatmul.msk.f32.gmra.mxu1 %vm223_vm3, %v1060_v63 }
  0xe2   : > { %1063 = vmatmul.msk.f32.gmra.mxu0 %vm223_vm3, %v1060_v63 }
 0x118   : > { %v275_v0 = vpop.f32.mrf.mxu1  ;;  %v252_v3 = vpop.f32.mrf.mxu0 }
 0x11c   : > { %v278_v1 = vpop.f32.mrf.mxu3  ;;  %v255_v2 = vpop.f32.mrf.mxu2 }
 0x124   : > { %v334_v4 = vpop.f32.mrf.mxu3  ;;  %v311_v5 = vpop.f32.mrf.mxu2 }
 0x125   : > { %v404_v6 = vpop.f32.mrf.mxu1  ;;  %v335_v20 = vadd.f32 %v334_v4, %v275_v0  ;;  %v312_v21 = vadd.f32 %v311_v5, %v252_v3 }
 0x127   : > { %v381_v7 = vpop.f32.mrf.mxu0  ;;  %v411_v25 = vadd.f32 %v404_v6, %v335_v20 }
 0x128   : > { %v410_v26 = vadd.f32 %v381_v7, %v312_v21 }
 0x12c   : > { %v337_v8 = vpop.f32.mrf.mxu3  ;;  %v314_v9 = vpop.f32.mrf.mxu2 }
 0x12d   : > { %v407_v10 = vpop.f32.mrf.mxu1  ;;  %v338_v30 = vadd.f32 %v337_v8, %v278_v1  ;;  %v315_v31 = vadd.f32 %v314_v9, %v255_v2  ;;  %v868_v8 = vpop.permute.xlu2 %867 }
 0x12f   : > { %v384_v11 = vpop.f32.mrf.mxu0  ;;  %v413_v37 = vadd.f32 %v407_v10, %v338_v30 }
 0x130   : > { %v412_v38 = vadd.f32 %v384_v11, %v315_v31 }
 0x134   : > { %v478_v12 = vpop.f32.mrf.mxu3  ;;  %v455_v13 = vpop.f32.mrf.mxu2 }
 0x135   : > { %v552_v14 = vpop.f32.mrf.mxu1  ;;  %v485_v28 = vadd.f32 %v478_v12, %v411_v25  ;;  %v484_v29 = vadd.f32 %v455_v13, %v410_v26 }
 0x137   : > { %v529_v15 = vpop.f32.mrf.mxu0  ;;  %v559_v34 = vadd.f32 %v552_v14, %v485_v28 }
 0x138   : > { %v558_v35 = vadd.f32 %v529_v15, %v484_v29 }
 0x13c   : > { %v481_v16 = vpop.f32.mrf.mxu3  ;;  %v458_v17 = vpop.f32.mrf.mxu2 }
 0x13d   : > { %v555_v18 = vpop.f32.mrf.mxu1  ;;  %v487_v42 = vadd.f32 %v481_v16, %v413_v37  ;;  %v486_v43 = vadd.f32 %v458_v17, %v412_v38 }
 0x13f   : > { %v532_v19 = vpop.f32.mrf.mxu0  ;;  %v561_v48 = vadd.f32 %v555_v18, %v487_v42 }
 0x140   : > { %v560_v49 = vadd.f32 %v532_v19, %v486_v43 }
 0x144   : > { %v626_v22 = vpop.f32.mrf.mxu3  ;;  %v603_v23 = vpop.f32.mrf.mxu2 }
 0x145   : > { %v700_v24 = vpop.f32.mrf.mxu1  ;;  %v633_v39 = vadd.f32 %v626_v22, %v559_v34  ;;  %v632_v40 = vadd.f32 %v603_v23, %v558_v35 }
 0x147   : > { %v677_v27 = vpop.f32.mrf.mxu0  ;;  %v707_v44 = vadd.f32 %v700_v24, %v633_v39 }
 0x148   : > { %v706_v45 = vadd.f32 %v677_v27, %v632_v40 }
 0x14c   : > { %v629_v32 = vpop.f32.mrf.mxu3  ;;  %v606_v33 = vpop.f32.mrf.mxu2 }
 0x14d   : > { %v703_v36 = vpop.f32.mrf.mxu1  ;;  %v635_v54 = vadd.f32 %v629_v32, %v561_v48  ;;  %v634_v55 = vadd.f32 %v606_v33, %v560_v49 }
 0x14f   : > { %v680_v41 = vpop.f32.mrf.mxu0  ;;  %v709_v61 = vadd.f32 %v703_v36, %v635_v54 }
 0x150   : > { %v708_v62 = vadd.f32 %v680_v41, %v634_v55 }
 0x154   : > { %v774_v46 = vpop.f32.mrf.mxu3  ;;  %v751_v47 = vpop.f32.mrf.mxu2 }
 0x155   : > { %v781_v50 = vadd.f32 %v774_v46, %v707_v44  ;;  %v780_v51 = vadd.f32 %v751_v47, %v706_v45  ;;  %v848_v52 = vpop.f32.mrf.mxu1 }
 0x157   : > { %v855_v56 = vadd.f32 %v848_v52, %v781_v50  ;;  %v825_v57 = vpop.f32.mrf.mxu0 }
 0x158   : > { %v854_v58 = vadd.f32 %v825_v57, %v780_v51 }
 0x159   : > { %v871_v59 = vadd.f32 %v863_v53, %v855_v56 }
 0x15a   : > { %v870_v60 = vadd.f32 %v863_v53, %v854_v58 }
 0x15b   : > { %vm875_vm11 = vcmp.ge.f32.partialorder %v871_v59, 0.0  ;;  %v879_v63 = vmul.f32 0.2, %v871_v59 }
 0x15c   : > { %vm874_vm12 = vcmp.ge.f32.partialorder %v870_v60, 0.0  ;;  %v878_v0 = vmul.f32 0.2, %v870_v60  ;;  %v777_v1 = vpop.f32.mrf.mxu3  ;;  %v754_v2 = vpop.f32.mrf.mxu2 }
 0x15d   : > { %v883_v3 = vsel %vm875_vm11, %v871_v59, %v879_v63  ;;  %v783_v4 = vadd.f32 %v777_v1, %v709_v61  ;;  %v782_v5 = vadd.f32 %v754_v2, %v708_v62  ;;  %v851_v6 = vpop.f32.mrf.mxu1 }
 0x15e   : > { %v882_v7 = vsel %vm874_vm12, %v870_v60, %v878_v0  ;;  %888 = vst.msk [vmem:[%s206_s11 + $0x8] sm:$0xff] %vm887_vm10, %v883_v3 }
 0x15f   : > { %886 = vst [vmem:[%s206_s11] sm:$0xff] %v882_v7  ;;  %v857_v9 = vadd.f32 %v851_v6, %v783_v4  ;;  %v828_v10 = vpop.f32.mrf.mxu0 }
 0x160   : > { %v856_v11 = vadd.f32 %v828_v10, %v782_v5 }
 0x161   : > { %v873_v12 = vadd.f32 %v868_v8, %v857_v9 }
 0x162   : > { %v872_v13 = vadd.f32 %v868_v8, %v856_v11 }
 0x163   : > { %vm877_vm13 = vcmp.ge.f32.partialorder %v873_v12, 0.0  ;;  %v881_v14 = vmul.f32 0.2, %v873_v12 }
 0x164   : > { %vm876_vm14 = vcmp.ge.f32.partialorder %v872_v13, 0.0  ;;  %v880_v15 = vmul.f32 0.2, %v872_v13 }
 0x165   : > { %v885_v16 = vsel %vm877_vm13, %v873_v12, %v881_v14 }
 0x166   : > { %v884_v17 = vsel %vm876_vm14, %v872_v13, %v880_v15  ;;  %890 = vst.msk [vmem:[%s206_s11 + $0x18] sm:$0xff] %vm887_vm10, %v885_v16 }
 0x167   : > { %889 = vst [vmem:[%s206_s11 + $0x10] sm:$0xff] %v884_v17 }
 0x168 PF: > { %s13_s16 = sadd.s32 1, %s1161_s16   ;;  %s1379_s12 = smov %s1153_s14 }
 0x169   : > { %p10_p7 = scmp.ge.s32.totalorder %s13_s16, 6   ;;  %s1380_s13 = smov %s1157_s15 }
 0x16a   : > { %s1381_s14 = smov %s1384_s17  ;;  %s1382_s15 = smov %s1388_s18 }
 0x16b   :  { %12 = sbr.rel (!%p10_p7) target bundleno = 3 (0x3), region = 70 }

</bundles_post_ra>
